<compile_context>
chip_gen: v7x
topology: tpu7x:2x2x1
jax: 0.10.0
libtpu: 0.0.40
codegen_flags: <defaults>
</compile_context>

<pallas_src>
import functools

import jax
import jax.numpy as jnp
from jax import lax
from jax.experimental import pallas as pl
from jax.experimental.pallas import tpu as pltpu


def _cross_attn_kernel(x_ref, y_ref,
                       wq_ref, bq_ref,
                       wk_ref,
                       wv_ref, bv_ref,
                       wo_ref, bo_ref,
                       out_ref, *, num_heads, head_dim):
    """One (batch, s1-tile) grid step.

    x_ref : (1, s1_t, qdim)      y_ref : (1, s2, kdim)
    wq_ref: (qdim, qdim)  (scale folded)   bq_ref: (1, qdim) (scale folded)
    wk_ref: (kdim, qdim)  (head-permuted; K bias dropped -- exact)
    wv_ref: (kdim, qdim)  (head-permuted)  bv_ref: (1, qdim)
    wo_ref: (qdim, qdim)                   bo_ref: (1, qdim)
    out_ref: (1, s1_t, qdim)
    """
    x = x_ref[0]                                   # (s1_t, qdim), native dtype
    y = y_ref[0]                                   # (s2, kdim),  native dtype
    in_dt = x.dtype

    # Full-width projections: lane-dense MXU passes, done once per tile.
    q_all = (jnp.dot(x, wq_ref[...], preferred_element_type=jnp.float32)
             + bq_ref[...]).astype(in_dt)                       # (s1_t, qdim)
    k_all = jnp.dot(y, wk_ref[...],
                    preferred_element_type=jnp.float32).astype(in_dt)  # (s2, qdim)
    v_all = (jnp.dot(y, wv_ref[...], preferred_element_type=jnp.float32)
             + bv_ref[...]).astype(in_dt)                       # (s2, qdim)

    ctx_parts = []
    for h in range(num_heads):                     # static unroll (H is small)
        lo = h * head_dim
        hi = lo + head_dim
        q = q_all[:, lo:hi]                        # (s1_t, D)
        k = k_all[:, lo:hi]                        # (s2,  D)
        v = v_all[:, lo:hi]                        # (s2,  D)

        # scores = q @ k^T  (scale already folded into q).
        s = lax.dot_general(q, k, (((1,), (1,)), ((), ())),
                            preferred_element_type=jnp.float32)    # (s1_t, s2)

        # Numerically-stable softmax with deferred normalization.
        m = jnp.max(s, axis=-1, keepdims=True)
        p = jnp.exp(s - m)                                          # unnormalized
        l = jnp.sum(p, axis=-1, keepdims=True)                      # (s1_t, 1)
        ctx = jnp.dot(p.astype(in_dt), v,
                      preferred_element_type=jnp.float32)           # (s1_t, D)
        ctx_parts.append(ctx * pl.reciprocal(l, approx=True))

    # Single full-K output projection of the concatenated per-head context.
    ctx_all = jnp.concatenate(ctx_parts, axis=-1).astype(in_dt)     # (s1_t, qdim)
    out = jnp.dot(ctx_all, wo_ref[...],
                  preferred_element_type=jnp.float32) + bo_ref[...]
    out_ref[0] = out.astype(out_ref.dtype)


def cross_attention(x, y, wq, bq, wk, bk, wv, bv, wo, bo, *, num_heads,
                    block_s1=None):
    """Pallas equivalent of CrossAttention.forward (qk_norm=False, no DCA).

    Weights are in (in_features, out_features) layout, i.e. W = torch_weight.T,
    so projections are `x @ W + b`.
    """
    b, s1, qdim = x.shape
    _, s2, kdim = y.shape
    assert qdim % num_heads == 0
    head_dim = qdim // num_heads
    assert head_dim % 8 == 0 and head_dim <= 128
    scale = head_dim ** (-0.5)
    dt = x.dtype

    # Fold the attention scale into the Q projection (trace-time, free).
    wq_s = (wq * scale).astype(dt)
    bq_s = (bq * scale).reshape(1, qdim).astype(dt)

    # Reproduce PyTorch's cat(k, v) -> view -> split head interleaving by a
    # one-time column permutation of the K/V projection weights so the kernel
    # can use natural head-major column slices.
    wkv = jnp.concatenate([wk, wv], axis=1).reshape(kdim, num_heads, 2 * head_dim)
    bkv = jnp.concatenate([bk, bv], axis=0).reshape(num_heads, 2 * head_dim)
    wk_eff = wkv[:, :, :head_dim].reshape(kdim, qdim).astype(dt)
    wv_eff = wkv[:, :, head_dim:].reshape(kdim, qdim).astype(dt)
    # K bias dropped: softmax is shift-invariant along the key axis -> exact.
    bv_eff = bkv[:, head_dim:].reshape(1, qdim).astype(dt)

    wo2 = wo.astype(dt)
    bo2 = bo.reshape(1, qdim).astype(dt)

    # s1 tiling: bound VMEM per step at production shapes; one tile when small.
    if block_s1 is None:
        if s1 <= 512:
            block_s1 = s1
        else:
            block_s1 = next((t for t in range(512, 7, -8) if s1 % t == 0), s1)
    assert s1 % block_s1 == 0
    n_s1 = s1 // block_s1

    kernel = functools.partial(_cross_attn_kernel,
                               num_heads=num_heads, head_dim=head_dim)

    return pl.pallas_call(
        kernel,
        out_shape=jax.ShapeDtypeStruct((b, s1, qdim), dt),
        grid_spec=pltpu.PrefetchScalarGridSpec(
            num_scalar_prefetch=0,
            grid=(b, n_s1),
            in_specs=[
                pl.BlockSpec((1, block_s1, qdim), lambda i, t: (i, t, 0)),  # x
                pl.BlockSpec((1, s2, kdim), lambda i, t: (i, 0, 0)),        # y
                pl.BlockSpec((qdim, qdim), lambda i, t: (0, 0)),            # wq (scaled)
                pl.BlockSpec((1, qdim), lambda i, t: (0, 0)),               # bq (scaled)
                pl.BlockSpec((kdim, qdim), lambda i, t: (0, 0)),            # wk (permuted)
                pl.BlockSpec((kdim, qdim), lambda i, t: (0, 0)),            # wv (permuted)
                pl.BlockSpec((1, qdim), lambda i, t: (0, 0)),               # bv (permuted)
                pl.BlockSpec((qdim, qdim), lambda i, t: (0, 0)),            # wo
                pl.BlockSpec((1, qdim), lambda i, t: (0, 0)),               # bo
            ],
            out_specs=pl.BlockSpec((1, block_s1, qdim), lambda i, t: (i, t, 0)),
        ),
        compiler_params=pltpu.CompilerParams(
            dimension_semantics=("parallel", "parallel"),
            vmem_limit_bytes=48 * 1024 * 1024),
    )(x, y, wq_s, bq_s, wk_eff, wv_eff, bv_eff, wo2, bo2)


def _reference(x, y, wq, bq, wk, bk, wv, bv, wo, bo, num_heads):
    """Pure-JAX transliteration of CrossAttention.forward (literal cat/view/split)."""
    b, s1, qdim = x.shape
    _, s2, _ = y.shape
    head_dim = qdim // num_heads
    scale = head_dim ** (-0.5)

    q = x @ wq + bq                                   # (b, s1, qdim)
    k = y @ wk + bk                                   # (b, s2, qdim)
    v = y @ wv + bv                                   # (b, s2, qdim)

    kv = jnp.concatenate([k, v], axis=-1)             # (b, s2, 2*qdim)
    kv = kv.reshape(b, s2, num_heads, 2 * head_dim)
    k = kv[..., :head_dim]                            # (b, s2, H, D)
    v = kv[..., head_dim:]                            # (b, s2, H, D)
    q = q.reshape(b, s1, num_heads, head_dim)

    qh = jnp.transpose(q, (0, 2, 1, 3))               # b h n d
    kh = jnp.transpose(k, (0, 2, 1, 3))
    vh = jnp.transpose(v, (0, 2, 1, 3))

    scores = jnp.einsum('bhqd,bhkd->bhqk', qh, kh) * scale
    attn = jax.nn.softmax(scores, axis=-1)
    ctx = jnp.einsum('bhqk,bhkd->bhqd', attn, vh)
    ctx = jnp.transpose(ctx, (0, 2, 1, 3)).reshape(b, s1, qdim)
    return ctx @ wo + bo


if __name__ == "__main__":
    key = jax.random.PRNGKey(0)

    batch, s1, s2 = 2, 16, 24
    qdim, kdim, num_heads = 64, 48, 2          # head_dim = 32 (div by 8, <=128)
    w_scale = 0.05

    ks = jax.random.split(key, 10)
    x = jax.random.normal(ks[0], (batch, s1, qdim), dtype=jnp.float32)
    y = jax.random.normal(ks[1], (batch, s2, kdim), dtype=jnp.float32)
    wq = jax.random.normal(ks[2], (qdim, qdim), dtype=jnp.float32) * w_scale
    bq = jax.random.normal(ks[3], (qdim,), dtype=jnp.float32) * w_scale
    wk = jax.random.normal(ks[4], (kdim, qdim), dtype=jnp.float32) * w_scale
    bk = jax.random.normal(ks[5], (qdim,), dtype=jnp.float32) * w_scale
    wv = jax.random.normal(ks[6], (kdim, qdim), dtype=jnp.float32) * w_scale
    bv = jax.random.normal(ks[7], (qdim,), dtype=jnp.float32) * w_scale
    wo = jax.random.normal(ks[8], (qdim, qdim), dtype=jnp.float32) * w_scale
    bo = jax.random.normal(ks[9], (qdim,), dtype=jnp.float32) * w_scale

    out = cross_attention(x, y, wq, bq, wk, bk, wv, bv, wo, bo,
                          num_heads=num_heads)
    out = jax.block_until_ready(out)

    ref = _reference(x, y, wq, bq, wk, bk, wv, bv, wo, bo, num_heads)
    assert out.shape == (batch, s1, qdim), out.shape
    max_err = float(jnp.max(jnp.abs(out - ref)))
    assert jnp.allclose(out, ref, atol=3e-3, rtol=3e-3), max_err

    print("KERNEL_OK")
</pallas_src>

<mosaic_0001>
module attributes {stable_mosaic.version = 11 : i64} {
  func.func @_cross_attn_kernel(%arg0: i32, %arg1: i32, %arg2: memref<1x16x64xf32, #tpu.memory_space<vmem>>, %arg3: memref<1x24x48xf32, #tpu.memory_space<vmem>>, %arg4: memref<64x64xf32, #tpu.memory_space<vmem>>, %arg5: memref<1x64xf32, #tpu.memory_space<vmem>>, %arg6: memref<48x64xf32, #tpu.memory_space<vmem>>, %arg7: memref<48x64xf32, #tpu.memory_space<vmem>>, %arg8: memref<1x64xf32, #tpu.memory_space<vmem>>, %arg9: memref<64x64xf32, #tpu.memory_space<vmem>>, %arg10: memref<1x64xf32, #tpu.memory_space<vmem>>, %arg11: memref<1x16x64xf32, #tpu.memory_space<vmem>>) attributes {dimension_semantics = [#tpu.dimension_semantics<parallel>, #tpu.dimension_semantics<parallel>], iteration_bounds = array<i64: 2, 1>, scalar_prefetch = 0 : i64, scratch_operands = 0 : i64, tpu.core_type = #tpu.core_type<tc>, window_params = [{transform_indices = @transform_0, window_bounds = array<i64: 1, 16, 64>}, {transform_indices = @transform_1, window_bounds = array<i64: 1, 24, 48>}, {pipeline_mode = #tpu.pipeline_mode<synchronous>, transform_indices = @transform_2, window_bounds = array<i64: 64, 64>}, {pipeline_mode = #tpu.pipeline_mode<synchronous>, transform_indices = @transform_3, window_bounds = array<i64: 1, 64>}, {pipeline_mode = #tpu.pipeline_mode<synchronous>, transform_indices = @transform_4, window_bounds = array<i64: 48, 64>}, {pipeline_mode = #tpu.pipeline_mode<synchronous>, transform_indices = @transform_5, window_bounds = array<i64: 48, 64>}, {pipeline_mode = #tpu.pipeline_mode<synchronous>, transform_indices = @transform_6, window_bounds = array<i64: 1, 64>}, {pipeline_mode = #tpu.pipeline_mode<synchronous>, transform_indices = @transform_7, window_bounds = array<i64: 64, 64>}, {pipeline_mode = #tpu.pipeline_mode<synchronous>, transform_indices = @transform_8, window_bounds = array<i64: 1, 64>}, {transform_indices = @transform_9, window_bounds = array<i64: 1, 16, 64>}]} {
    %c0 = arith.constant 0 : index
    %c0_0 = arith.constant 0 : index
    %c0_1 = arith.constant 0 : index
    %0 = vector.load %arg2[%c0, %c0_0, %c0_1] : memref<1x16x64xf32, #tpu.memory_space<vmem>>, vector<1x16x64xf32>
    %1 = vector.shape_cast %0 : vector<1x16x64xf32> to vector<16x64xf32>
    %c0_2 = arith.constant 0 : index
    %c0_3 = arith.constant 0 : index
    %c0_4 = arith.constant 0 : index
    %2 = vector.load %arg3[%c0_2, %c0_3, %c0_4] : memref<1x24x48xf32, #tpu.memory_space<vmem>>, vector<1x24x48xf32>
    %3 = vector.shape_cast %2 : vector<1x24x48xf32> to vector<24x48xf32>
    %c0_5 = arith.constant 0 : index
    %c0_6 = arith.constant 0 : index
    %4 = vector.load %arg4[%c0_5, %c0_6] : memref<64x64xf32, #tpu.memory_space<vmem>>, vector<64x64xf32>
    %cst = arith.constant dense<0.000000e+00> : vector<16x64xf32>
    %5 = tpu.matmul %1, %4, %cst {dimension_numbers = #tpu.dot_dimension_numbers<[1], [0], [0], [1], [0, 0, 1, 1], [], []>} : vector<16x64xf32>, vector<64x64xf32>, vector<16x64xf32> -> vector<16x64xf32>
    %c0_7 = arith.constant 0 : index
    %c0_8 = arith.constant 0 : index
    %6 = vector.load %arg5[%c0_7, %c0_8] : memref<1x64xf32, #tpu.memory_space<vmem>>, vector<1x64xf32>
    %7 = vector.broadcast %6 : vector<1x64xf32> to vector<16x64xf32>
    %8 = arith.addf %5, %7 : vector<16x64xf32>
    %c0_9 = arith.constant 0 : index
    %c0_10 = arith.constant 0 : index
    %9 = vector.load %arg6[%c0_9, %c0_10] : memref<48x64xf32, #tpu.memory_space<vmem>>, vector<48x64xf32>
    %cst_11 = arith.constant dense<0.000000e+00> : vector<24x64xf32>
    %10 = tpu.matmul %3, %9, %cst_11 {dimension_numbers = #tpu.dot_dimension_numbers<[1], [0], [0], [1], [0, 0, 1, 1], [], []>} : vector<24x48xf32>, vector<48x64xf32>, vector<24x64xf32> -> vector<24x64xf32>
    %c0_12 = arith.constant 0 : index
    %c0_13 = arith.constant 0 : index
    %11 = vector.load %arg7[%c0_12, %c0_13] : memref<48x64xf32, #tpu.memory_space<vmem>>, vector<48x64xf32>
    %cst_14 = arith.constant dense<0.000000e+00> : vector<24x64xf32>
    %12 = tpu.matmul %3, %11, %cst_14 {dimension_numbers = #tpu.dot_dimension_numbers<[1], [0], [0], [1], [0, 0, 1, 1], [], []>} : vector<24x48xf32>, vector<48x64xf32>, vector<24x64xf32> -> vector<24x64xf32>
    %c0_15 = arith.constant 0 : index
    %c0_16 = arith.constant 0 : index
    %13 = vector.load %arg8[%c0_15, %c0_16] : memref<1x64xf32, #tpu.memory_space<vmem>>, vector<1x64xf32>
    %14 = vector.broadcast %13 : vector<1x64xf32> to vector<24x64xf32>
    %15 = arith.addf %12, %14 : vector<24x64xf32>
    %16 = vector.extract_strided_slice %8 {offsets = [0, 0], sizes = [16, 32], strides = [1, 1]} : vector<16x64xf32> to vector<16x32xf32>
    %17 = vector.extract_strided_slice %10 {offsets = [0, 0], sizes = [24, 32], strides = [1, 1]} : vector<24x64xf32> to vector<24x32xf32>
    %18 = vector.extract_strided_slice %15 {offsets = [0, 0], sizes = [24, 32], strides = [1, 1]} : vector<24x64xf32> to vector<24x32xf32>
    %cst_17 = arith.constant dense<0.000000e+00> : vector<16x24xf32>
    %19 = tpu.matmul %16, %17, %cst_17 {dimension_numbers = #tpu.dot_dimension_numbers<[1], [1], [0], [0], [0, 0, 1, 0], [], []>} : vector<16x32xf32>, vector<24x32xf32>, vector<16x24xf32> -> vector<16x24xf32>
    %cst_18 = arith.constant dense<0xFF800000> : vector<16xf32>
    %20 = vector.multi_reduction <maximumf>, %19, %cst_18 [1] : vector<16x24xf32> to vector<16xf32>
    %21 = vector.shape_cast %20 : vector<16xf32> to vector<16x1xf32>
    %22 = vector.broadcast %21 : vector<16x1xf32> to vector<16x24xf32>
    %23 = arith.subf %19, %22 : vector<16x24xf32>
    %24 = math.exp %23 : vector<16x24xf32>
    %cst_19 = arith.constant dense<0.000000e+00> : vector<16xf32>
    %25 = vector.multi_reduction <add>, %24, %cst_19 [1] : vector<16x24xf32> to vector<16xf32>
    %26 = vector.shape_cast %25 : vector<16xf32> to vector<16x1xf32>
    %cst_20 = arith.constant dense<0.000000e+00> : vector<16x32xf32>
    %27 = tpu.matmul %24, %18, %cst_20 {dimension_numbers = #tpu.dot_dimension_numbers<[1], [0], [0], [1], [0, 0, 1, 1], [], []>} : vector<16x24xf32>, vector<24x32xf32>, vector<16x32xf32> -> vector<16x32xf32>
    %28 = tpu.reciprocal %26 {approx = true} : vector<16x1xf32> -> vector<16x1xf32>
    %29 = vector.broadcast %28 : vector<16x1xf32> to vector<16x32xf32>
    %30 = arith.mulf %27, %29 : vector<16x32xf32>
    %31 = vector.extract_strided_slice %8 {offsets = [0, 32], sizes = [16, 32], strides = [1, 1]} : vector<16x64xf32> to vector<16x32xf32>
    %32 = vector.extract_strided_slice %10 {offsets = [0, 32], sizes = [24, 32], strides = [1, 1]} : vector<24x64xf32> to vector<24x32xf32>
    %33 = vector.extract_strided_slice %15 {offsets = [0, 32], sizes = [24, 32], strides = [1, 1]} : vector<24x64xf32> to vector<24x32xf32>
    %cst_21 = arith.constant dense<0.000000e+00> : vector<16x24xf32>
    %34 = tpu.matmul %31, %32, %cst_21 {dimension_numbers = #tpu.dot_dimension_numbers<[1], [1], [0], [0], [0, 0, 1, 0], [], []>} : vector<16x32xf32>, vector<24x32xf32>, vector<16x24xf32> -> vector<16x24xf32>
    %cst_22 = arith.constant dense<0xFF800000> : vector<16xf32>
    %35 = vector.multi_reduction <maximumf>, %34, %cst_22 [1] : vector<16x24xf32> to vector<16xf32>
    %36 = vector.shape_cast %35 : vector<16xf32> to vector<16x1xf32>
    %37 = vector.broadcast %36 : vector<16x1xf32> to vector<16x24xf32>
    %38 = arith.subf %34, %37 : vector<16x24xf32>
    %39 = math.exp %38 : vector<16x24xf32>
    %cst_23 = arith.constant dense<0.000000e+00> : vector<16xf32>
    %40 = vector.multi_reduction <add>, %39, %cst_23 [1] : vector<16x24xf32> to vector<16xf32>
    %41 = vector.shape_cast %40 : vector<16xf32> to vector<16x1xf32>
    %cst_24 = arith.constant dense<0.000000e+00> : vector<16x32xf32>
    %42 = tpu.matmul %39, %33, %cst_24 {dimension_numbers = #tpu.dot_dimension_numbers<[1], [0], [0], [1], [0, 0, 1, 1], [], []>} : vector<16x24xf32>, vector<24x32xf32>, vector<16x32xf32> -> vector<16x32xf32>
    %43 = tpu.reciprocal %41 {approx = true} : vector<16x1xf32> -> vector<16x1xf32>
    %44 = vector.broadcast %43 : vector<16x1xf32> to vector<16x32xf32>
    %45 = arith.mulf %42, %44 : vector<16x32xf32>
    %46 = tpu.concatenate %30, %45 in 1 : vector<16x32xf32>, vector<16x32xf32> -> vector<16x64xf32>
    %c0_25 = arith.constant 0 : index
    %c0_26 = arith.constant 0 : index
    %47 = vector.load %arg9[%c0_25, %c0_26] : memref<64x64xf32, #tpu.memory_space<vmem>>, vector<64x64xf32>
    %cst_27 = arith.constant dense<0.000000e+00> : vector<16x64xf32>
    %48 = tpu.matmul %46, %47, %cst_27 {dimension_numbers = #tpu.dot_dimension_numbers<[1], [0], [0], [1], [0, 0, 1, 1], [], []>} : vector<16x64xf32>, vector<64x64xf32>, vector<16x64xf32> -> vector<16x64xf32>
    %c0_28 = arith.constant 0 : index
    %c0_29 = arith.constant 0 : index
    %49 = vector.load %arg10[%c0_28, %c0_29] : memref<1x64xf32, #tpu.memory_space<vmem>>, vector<1x64xf32>
    %50 = vector.broadcast %49 : vector<1x64xf32> to vector<16x64xf32>
    %51 = arith.addf %48, %50 : vector<16x64xf32>
    %c0_30 = arith.constant 0 : index
    %c0_31 = arith.constant 0 : index
    %c0_32 = arith.constant 0 : index
    %52 = vector.load %arg11[%c0_30, %c0_31, %c0_32] : memref<1x16x64xf32, #tpu.memory_space<vmem>>, vector<1x16x64xf32>
    %53 = vector.shape_cast %52 : vector<1x16x64xf32> to vector<16x64xf32>
    %54 = vector.shape_cast %51 : vector<16x64xf32> to vector<1x16x64xf32>
    tpu.vector_store %arg11[%c0_30, %c0_31, %c0_32], %54 {strides = array<i32>} : memref<1x16x64xf32, #tpu.memory_space<vmem>>, vector<1x16x64xf32>,
    return
  }
  func.func @transform_0(%arg0: i32, %arg1: i32) -> (i32, i32, i32) {
    %c0_i32 = arith.constant 0 : i32
    %c0_i32_0 = arith.constant 0 : i32
    return %arg0, %arg1, %c0_i32 : i32, i32, i32
  }
  func.func @transform_1(%arg0: i32, %arg1: i32) -> (i32, i32, i32) {
    %c0_i32 = arith.constant 0 : i32
    %c0_i32_0 = arith.constant 0 : i32
    %c0_i32_1 = arith.constant 0 : i32
    return %arg0, %c0_i32, %c0_i32_0 : i32, i32, i32
  }
  func.func @transform_2(%arg0: i32, %arg1: i32) -> (i32, i32) {
    %c0_i32 = arith.constant 0 : i32
    %c0_i32_0 = arith.constant 0 : i32
    %c0_i32_1 = arith.constant 0 : i32
    return %c0_i32, %c0_i32_0 : i32, i32
  }
  func.func @transform_3(%arg0: i32, %arg1: i32) -> (i32, i32) {
    %c0_i32 = arith.constant 0 : i32
    %c0_i32_0 = arith.constant 0 : i32
    %c0_i32_1 = arith.constant 0 : i32
    return %c0_i32, %c0_i32_0 : i32, i32
  }
  func.func @transform_4(%arg0: i32, %arg1: i32) -> (i32, i32) {
    %c0_i32 = arith.constant 0 : i32
    %c0_i32_0 = arith.constant 0 : i32
    %c0_i32_1 = arith.constant 0 : i32
    return %c0_i32, %c0_i32_0 : i32, i32
  }
  func.func @transform_5(%arg0: i32, %arg1: i32) -> (i32, i32) {
    %c0_i32 = arith.constant 0 : i32
    %c0_i32_0 = arith.constant 0 : i32
    %c0_i32_1 = arith.constant 0 : i32
    return %c0_i32, %c0_i32_0 : i32, i32
  }
  func.func @transform_6(%arg0: i32, %arg1: i32) -> (i32, i32) {
    %c0_i32 = arith.constant 0 : i32
    %c0_i32_0 = arith.constant 0 : i32
    %c0_i32_1 = arith.constant 0 : i32
    return %c0_i32, %c0_i32_0 : i32, i32
  }
  func.func @transform_7(%arg0: i32, %arg1: i32) -> (i32, i32) {
    %c0_i32 = arith.constant 0 : i32
    %c0_i32_0 = arith.constant 0 : i32
    %c0_i32_1 = arith.constant 0 : i32
    return %c0_i32, %c0_i32_0 : i32, i32
  }
  func.func @transform_8(%arg0: i32, %arg1: i32) -> (i32, i32) {
    %c0_i32 = arith.constant 0 : i32
    %c0_i32_0 = arith.constant 0 : i32
    %c0_i32_1 = arith.constant 0 : i32
    return %c0_i32, %c0_i32_0 : i32, i32
  }
  func.func @transform_9(%arg0: i32, %arg1: i32) -> (i32, i32, i32) {
    %c0_i32 = arith.constant 0 : i32
    %c0_i32_0 = arith.constant 0 : i32
    return %arg0, %arg1, %c0_i32 : i32, i32, i32
  }
}

</mosaic_0001>

<bundles_post_ra>
// kernel: tpu_custom_call.1
= control target key start
LH: loop header
LB: loop body
LE: loop exit
PB: predicated region body
PF: predicated region fallthrough
CT: control target
= control target key end

     0   :  { %s2675_s0 = inlined_call_operand.hbm [shape: f32[2,16,64], index: 0, kind: input, shape index: {}]   ;;  %s2676_s1 = inlined_call_operand.hbm [shape: f32[2,24,48], index: 1, kind: input, shape index: {}]   ;;  %s2677_s2 = inlined_call_operand.hbm [shape: f32[64,64], index: 2, kind: input, shape index: {}]   ;;  %s2678_s3 = inlined_call_operand.vmem [shape: f32[1,64], index: 3, kind: input, shape index: {}]   ;;  %s2679_s4 = inlined_call_operand.hbm [shape: f32[48,64], index: 4, kind: input, shape index: {}]   ;;  %s2680_s5 = inlined_call_operand.hbm [shape: f32[48,64], index: 5, kind: input, shape index: {}]   ;;  %s2681_s6 = inlined_call_operand.vmem [shape: f32[1,64], index: 6, kind: input, shape index: {}]   ;;  %s2682_s7 = inlined_call_operand.hbm [shape: f32[64,64], index: 7, kind: input, shape index: {}]   ;;  %s2683_s8 = inlined_call_operand.vmem [shape: f32[1,64], index: 8, kind: input, shape index: {}]   ;;  %s2684_s9 = inlined_call_operand.hbm [shape: f32[2,16,64], index: 9, kind: output, shape index: {}]  }
   0x1   :  { %2693 = sst [smem:[#allocation23_spill]] %s2675_s0 }
   0x2   :  { %2694 = sst [smem:[#allocation24_spill]] %s2677_s2 }
   0x3   :  { %2695 = sst [smem:[#allocation25_spill]] %s2679_s4 }
   0x4   :  { %2696 = sst [smem:[#allocation26_spill]] %s2680_s5 }
   0x5   :  { %2697 = sst [smem:[#allocation27_spill]] %s2683_s8 }
   0x6   :  { %2698 = sst [smem:[#allocation28_spill]] %s2684_s9 }
   0x7   :  { %14 = vsyncpa [#allocation3], 0 }
   0x8   :  { %16 = vsyncpa [#allocation3 + $0x1], 0 }
   0x9   :  { %17 = vsyncpa [#allocation6], 0 }
   0xa   :  { %19 = vsyncpa [#allocation6 + $0x1], 0 }
   0xb   :  { %20 = vsyncpa [#allocation9], 0 }
   0xc   :  { %21 = vsyncpa [#allocation12], 0 }
   0xd   :  { %22 = vsyncpa [#allocation4], 0 }
   0xe   :  { %24 = vsyncpa [#allocation4 + $0x1], 0  ;;  %s2218_s30 = smov 0   ;;  %s2220_s10 = smov 0  }
   0xf   :  { %s2222_s11 = smov 0   ;;  %s2224_s12 = smov 0  }
  0x10   :  { %s2226_s13 = smov 0   ;;  %s2228_s14 = smov 0  }
  0x11 LB: > { %2699 = sst [smem:[#allocation20_spill]] %s2130_s30  ;;  %s2249_s15 = sadd.s32 4294967295, %s2150_s14   ;;  %s2150_s14 = sphi %s2228_s14, %s30_s14   ;;  %s2146_s13 = sphi %s2226_s13, %s2737_s13   ;;  %s2142_s12 = sphi %s2224_s12, %s2736_s12   ;;  %s2138_s11 = sphi %s2222_s11, %s2735_s11   ;;  %s2134_s10 = sphi %s2220_s10, %s2734_s10   ;;  %s2130_s30 = sphi %s2218_s30, %s2733_s30  }
  0x12   : > { %2700 = sst [smem:[#allocation21_spill]] %s2142_s12  ;;  %s1438_s16 = sadd.s32 4294967294, %s2150_s14  }
  0x13   : > { %p64_p0 = scmp.ne.s32.totalorder %s2134_s10, %s2130_s30  ;;  %p2686_p1 = scmp.eq.s32.totalorder %s2249_s15, 0 }
  0x14   : > { %p269_p3 = scmp.eq.s32.totalorder %s1438_s16, 1  ;;  %p1439_p5 = scmp.ge.s32.totalorder %s2150_s14, 1 }
  0x15   : > { %p2258_p4 = por %p2686_p1, %p64_p0  ;;  %p276_p7 = scmp.lt.s32.totalorder %s2150_s14, 3 }
  0x16   : > { %p2263_p6 = por %p269_p3, %p64_p0  ;;  %s2152_s20 = smov [#allocation7]  }
  0x17   : > { %s2701_s17 = scalar_select %p2258_p4, 1, 0 }
  0x18   : > { %s2702_s18 = scalar_select %p2263_p6, 1, 0 }
  0x19   : > { %p2268_p8 = pnand %p1439_p5, %p276_p7  ;;  %s288_s21 = sshll.u32 %s2152_s20, 4  ;;  %s2272_s21 = int_to_ptr.vmem [resolvable:$true] %s288_s21 }
  0x1a   : > { %2703 = sst [smem:[#allocation22_spill]] %s2702_s18  ;;  %s2153_s23 = smov [#allocation8]  }
  0x1b   : > { %s2704_s19 = scalar_select %p2268_p8, 1, 0 }
  0x1c   : > { %p1759_p9 = pneg %p2268_p8  ;;  %s304_s24 = sshll.u32 %s2153_s23, 4  ;;  %s2283_s24 = int_to_ptr.vmem [resolvable:$true] %s304_s24 }
  0x1d   : > { %s2154_s25 = smov [#allocation10]   ;;  %s2706_s2 = sld [smem:[#allocation24_spill]] }
  0x1e   : > { %p2279_p11 = pnand %p1759_p9, %p2686_p1  ;;  %s2285_s26 = sshll.u32 %s2154_s25, 4  ;;  %s318_s26 = int_to_ptr.vmem [resolvable:$true] %s2285_s26 }
  0x20   : > { %p2295_p13 = pneg %p2279_p11 }
  0x23   : > { %s1880_s29 = scalar_lea.hbm %s2706_s2, 1024 }
  0x24   : > { %p1881_p12 = scmp.ne.s32.totalorder %s2706_s2, %s1880_s29  ;;  %p1887_p5 = scmp.lt.u32.totalorder %s1880_s29, %s2706_s2 }
  0x26   : > { %p1883_p0 = pnand %p2295_p13, %p1881_p12 }
  0x28   : > { %p1884_p3 = pneg %p1883_p0 }
  0x2a   : > { %p1889_p7 = pnand %p1887_p5, %p1884_p3 }
  0x2c   : > { %1892 = shalt.err (!%p1889_p7)
}
  0x2d   : > { %s1893_s27 = scalar_lea.vmem %s2272_s21, 1024  ;;  %p1901_p2 = scmp.lt.s32.totalorder %s2272_s21, %s2272_s21 }
  0x2e   : > { %p1894_p9 = scmp.ne.s32.totalorder %s2272_s21, %s1893_s27  ;;  %p1902_p6 = scmp.lt.s32.totalorder %s1893_s27, %s1893_s27 }
  0x30   : > { %p1896_p10 = pnand %p1894_p9, %p2295_p13  ;;  %p1903_p12 = por %p1902_p6, %p1901_p2 }
  0x32   : > { %p1897_p1 = pneg %p1896_p10 }
  0x34   : > { %p1904_p0 = pnand %p1903_p12, %p1897_p1 }
  0x36   : > { %1907 = shalt.err (!%p1904_p0)
}
  0x37   : > { %s2691_s28 = smov 128   ;;  %s2156_s29 = smov 8  }
  0x38   : > { %1762 = dma.hbm_to_vmem [thread:$0]  (!%p2279_p11), %s2706_s2, 1024, %s2272_s21, [#allocation6], %s2691_s28, %s2691_s28, %s2156_s29  }
  0x39   : > { %s2708_s4 = sld [smem:[#allocation25_spill]] }
  0x3f   : > { %s1908_s27 = scalar_lea.hbm %s2708_s4, 768 }
  0x40   : > { %p1909_p1 = scmp.ne.s32.totalorder %s2708_s4, %s1908_s27  ;;  %p1915_p10 = scmp.lt.u32.totalorder %s1908_s27, %s2708_s4 }
  0x42   : > { %p1911_p2 = pnand %p1909_p1, %p2295_p13 }
  0x44   : > { %p1912_p6 = pneg %p1911_p2 }
  0x46   : > { %p1917_p3 = pnand %p1915_p10, %p1912_p6 }
  0x48   : > { %1920 = shalt.err (!%p1917_p3)
}
  0x49   : > { %s1921_s21 = scalar_lea.vmem %s2283_s24, 768  ;;  %p1929_p12 = scmp.lt.s32.totalorder %s2283_s24, %s2283_s24 }
  0x4a   : > { %p1922_p5 = scmp.ne.s32.totalorder %s2283_s24, %s1921_s21  ;;  %p1930_p0 = scmp.lt.s32.totalorder %s1921_s21, %s1921_s21 }
  0x4c   : > { %p1924_p7 = pnand %p1922_p5, %p2295_p13  ;;  %p1931_p1 = por %p1930_p0, %p1929_p12 }
  0x4e   : > { %p1925_p9 = pneg %p1924_p7 }
  0x50   : > { %p1932_p2 = pnand %p1931_p1, %p1925_p9 }
  0x52   : > { %1935 = shalt.err (!%p1932_p2)
}
  0x53   : > { %1765 = dma.hbm_to_vmem [thread:$0]  (!%p2279_p11), %s2708_s4, 768, %s2283_s24, [#allocation9], %s2691_s28, %s2691_s28, %s2156_s29  }
  0x54   : > { %s2709_s5 = sld [smem:[#allocation26_spill]] }
  0x5a   : > { %s1936_s16 = scalar_lea.hbm %s2709_s5, 768 }
  0x5b   : > { %p1937_p6 = scmp.ne.s32.totalorder %s2709_s5, %s1936_s16  ;;  %p1943_p5 = scmp.lt.u32.totalorder %s1936_s16, %s2709_s5 }
  0x5d   : > { %p1939_p10 = pnand %p1937_p6, %p2295_p13 }
  0x5f   : > { %p1940_p3 = pneg %p1939_p10 }
  0x61   : > { %p1945_p7 = pnand %p1943_p5, %p1940_p3 }
  0x63   : > { %1948 = shalt.err (!%p1945_p7)
}
  0x64   : > { %s1949_s21 = scalar_lea.vmem %s318_s26, 768  ;;  %p1957_p1 = scmp.lt.s32.totalorder %s318_s26, %s318_s26 }
  0x65   : > { %p1950_p9 = scmp.ne.s32.totalorder %s318_s26, %s1949_s21  ;;  %p1958_p2 = scmp.lt.s32.totalorder %s1949_s21, %s1949_s21 }
  0x67   : > { %p1952_p12 = pnand %p1950_p9, %p2295_p13  ;;  %p1959_p4 = por %p1958_p2, %p1957_p1 }
  0x69   : > { %p1953_p0 = pneg %p1952_p12 }
  0x6b   : > { %p1960_p8 = pnand %p1959_p4, %p1953_p0 }
  0x6d   : > { %1963 = shalt.err (!%p1960_p8)
}
  0x6e   : > { %1768 = dma.hbm_to_vmem [thread:$0]  (!%p2279_p11), %s2709_s5, 768, %s318_s26, [#allocation9], %s2691_s28, %s2691_s28, %s2156_s29  }
  0x6f   : > { %s2157_s9 = smov [#allocation11]   ;;  %s1964_s20 = scalar_lea.hbm %s2682_s7, 1024 }
  0x70   : > { %s333_s30 = sshll.u32 %s2157_s9, 4  ;;  %p1965_p4 = scmp.ne.s32.totalorder %s2682_s7, %s1964_s20  ;;  %s334_s30 = int_to_ptr.vmem [resolvable:$true] %s333_s30 }
  0x71   : > { %p1971_p10 = scmp.lt.u32.totalorder %s1964_s20, %s2682_s7 }
  0x72   : > { %p1967_p8 = pnand %p1965_p4, %p2295_p13 }
  0x74   : > { %p1968_p6 = pneg %p1967_p8 }
  0x76   : > { %p1973_p3 = pnand %p1971_p10, %p1968_p6 }
  0x78   : > { %1976 = shalt.err (!%p1973_p3)
}
  0x79   : > { %s1977_s26 = scalar_lea.vmem %s334_s30, 1024  ;;  %p1985_p12 = scmp.lt.s32.totalorder %s334_s30, %s334_s30 }
  0x7a   : > { %p1978_p5 = scmp.ne.s32.totalorder %s334_s30, %s1977_s26  ;;  %p1986_p0 = scmp.lt.s32.totalorder %s1977_s26, %s1977_s26 }
  0x7c   : > { %p1980_p7 = pnand %p1978_p5, %p2295_p13  ;;  %p1987_p1 = por %p1986_p0, %p1985_p12 }
  0x7e   : > { %p1981_p9 = pneg %p1980_p7 }
  0x80   : > { %p1988_p2 = pnand %p1987_p1, %p1981_p9 }
  0x82   : > { %1991 = shalt.err (!%p1988_p2)
}
  0x83   : > { %1771 = dma.hbm_to_vmem [thread:$0]  (!%p2279_p11), %s2682_s7, 1024, %s334_s30, [#allocation12], %s2691_s28, %s2691_s28, %s2156_s29  }
  0x84   : > { %s42_s18 = sadd.s32 1, %s2146_s13  ;;  %s51_s22 = sadd.s32 1, %s2138_s11 }
  0x85   : > { %p44_p13 = scmp.ge.s32.totalorder %s42_s18, 2  ;;  %p58_p4 = scmp.ne.s32.totalorder %s2138_s11, %s2134_s10 }
  0x86   : > { %p59_p8 = scmp.eq.s32.totalorder %s2150_s14, 0  ;;  %p1787_p6 = scmp.lt.s32.totalorder %s2150_s14, 2 }
  0x87   : > { %s2739_s18 = smov (%p44_p13, %s42_s18), 0  ;;  %p2710_p3 = scmp.eq.s32.totalorder %s2249_s15, 1 }
  0x88   : > { %p60_p10 = por %p59_p8, %p58_p4  ;;  %s46_s12 = ssub.s32 %s2146_s13, %s2739_s18 }
  0x89   : > { %p2398_p5 = por %p2710_p3, %p58_p4  ;;  %s2405_s16 = sand.u32 1, %s2138_s11  }
  0x8a   : > { %p49_p11 = scmp.eq.s32.totalorder %s46_s12, 0  ;;  %s1445_s30 = sshll.u32 %s2405_s16, 4 }
  0x8b   : > { %s1488_s20 = sshll.u32 %s2146_s13, 8  ;;  %s2712_s0 = sld [smem:[#allocation23_spill]] }
  0x8c   : > { %s2410_s23 = scalar_select %p49_p11, %s2138_s11, %s51_s22  }
  0x8d   : > { %s354_s26 = scalar_lea.vmem [#allocation2], %s1445_s30  ;;  %p2419_p7 = pnand %p1787_p6, %p60_p10 }
  0x8e   : > { %s363_s24 = sshll.u32 %s354_s26, 4  ;;  %s351_s12 = scalar_lea.sflag [#allocation3], %s2405_s16  ;;  %s2423_s24 = int_to_ptr.vmem [resolvable:$true] %s363_s24 }
  0x8f   : > { %p1994_p12 = pneg %p2419_p7 }
  0x91   : > { %s2415_s21 = scalar_lea.hbm %s2712_s0, %s1488_s20  ;;  %s1997_s27 = scalar_lea.hbm %s2712_s0, 512 }
  0x92   : > { %s1992_s25 = scalar_lea.hbm %s2415_s21, 256  ;;  %p1998_p2 = scmp.lt.u32.totalorder %s2415_s21, %s2712_s0 }
  0x93   : > { %p1993_p9 = scmp.ne.s32.totalorder %s2415_s21, %s1992_s25  ;;  %p1999_p13 = scmp.lt.u32.totalorder %s1997_s27, %s1992_s25 }
  0x94   : > { %p2001_p8 = scmp.lt.u32.totalorder %s1992_s25, %s2415_s21 }
  0x95   : > { %p1995_p0 = pnand %p1994_p12, %p1993_p9  ;;  %p2000_p4 = por %p1999_p13, %p1998_p2 }
  0x97   : > { %p1996_p1 = pneg %p1995_p0  ;;  %p2002_p6 = por %p2001_p8, %p2000_p4 }
  0x99   : > { %p2003_p10 = pnand %p2002_p6, %p1996_p1 }
  0x9b   : > { %2006 = shalt.err (!%p2003_p10)
}
  0x9c   : > { %s2007_s22 = scalar_lea.vmem %s2423_s24, 256  ;;  %s2158_s30 = smov [#allocation2]  }
  0x9d   : > { %p2008_p3 = scmp.ne.s32.totalorder %s2423_s24, %s2007_s22  ;;  %s2012_s20 = sshll.u32 %s2158_s30, 4  ;;  %s2013_s20 = int_to_ptr.vmem [resolvable:$false] %s2012_s20 }
  0x9e   : > { %s2014_s28 = scalar_lea.vmem %s2013_s20, 512  ;;  %p2015_p0 = scmp.lt.s32.totalorder %s2423_s24, %s2013_s20 }
  0x9f   : > { %p2010_p11 = pnand %p2008_p3, %p1994_p12  ;;  %p2016_p2 = scmp.lt.s32.totalorder %s2014_s28, %s2007_s22 }
  0xa1   : > { %p2011_p9 = pneg %p2010_p11  ;;  %p2017_p13 = por %p2016_p2, %p2015_p0 }
  0xa3   : > { %p2018_p4 = pnand %p2017_p13, %p2011_p9 }
  0xa5   : > { %2021 = shalt.err (!%p2018_p4)
}
  0xa6   : > { %s2714_s25 = smov 128   ;;  %s1734_s27 = smul.u32 24, %s2405_s16 }
  0xa7   : > { %1775 = dma.hbm_to_vmem [thread:$0]  (!%p2419_p7), %s2415_s21, 256, %s2423_s24, %s351_s12, %s2714_s25, %s2714_s25, %s2156_s29  }
  0xa8   : > { %s1735_s26 = smul.u32 384, %s2146_s13  ;;  %s377_s28 = scalar_lea.vmem [#allocation5], %s1734_s27 }
  0xa9   : > { %s384_s0 = sshll.u32 %s377_s28, 4  ;;  %s2715_s2 = sand.u32 1, %s2150_s14   ;;  %s2464_s0 = int_to_ptr.vmem [resolvable:$true] %s384_s0 }
  0xaa   : > { %s2462_s20 = scalar_lea.hbm %s2676_s1, %s1735_s26  ;;  %s2468_s4 = scalar_lea.sflag [#allocation6], %s2715_s2 }
  0xab   : > { %s2022_s5 = scalar_lea.hbm %s2462_s20, 384  ;;  %s2027_s24 = scalar_lea.hbm %s2676_s1, 768 }
  0xac   : > { %p2023_p1 = scmp.ne.s32.totalorder %s2462_s20, %s2022_s5  ;;  %p2028_p10 = scmp.lt.u32.totalorder %s2462_s20, %s2676_s1 }
  0xad   : > { %p2029_p3 = scmp.lt.u32.totalorder %s2027_s24, %s2022_s5  ;;  %p2031_p9 = scmp.lt.u32.totalorder %s2022_s5, %s2462_s20 }
  0xae   : > { %p2025_p8 = pnand %p2023_p1, %p1994_p12 }
  0xaf   : > { %p2030_p11 = por %p2029_p3, %p2028_p10 }
  0xb0   : > { %p2026_p6 = pneg %p2025_p8 }
  0xb1   : > { %p2032_p0 = por %p2031_p9, %p2030_p11 }
  0xb3   : > { %p2033_p2 = pnand %p2032_p0, %p2026_p6 }
  0xb5   : > { %2036 = shalt.err (!%p2033_p2)
}
  0xb6   : > { %s2037_s2 = scalar_lea.vmem %s2464_s0, 384  ;;  %s2159_s27 = smov [#allocation5]  }
  0xb7   : > { %p2038_p13 = scmp.ne.s32.totalorder %s2464_s0, %s2037_s2  ;;  %s2042_s22 = sshll.u32 %s2159_s27, 4  ;;  %s2043_s22 = int_to_ptr.vmem [resolvable:$false] %s2042_s22 }
  0xb8   : > { %s2044_s30 = scalar_lea.vmem %s2043_s22, 768  ;;  %p2045_p8 = scmp.lt.s32.totalorder %s2464_s0, %s2043_s22 }
  0xb9   : > { %p2040_p4 = pnand %p2038_p13, %p1994_p12  ;;  %p2046_p10 = scmp.lt.s32.totalorder %s2044_s30, %s2037_s2 }
  0xbb   : > { %p2041_p1 = pneg %p2040_p4  ;;  %p2047_p3 = por %p2046_p10, %p2045_p8 }
  0xbd   : > { %p2048_p11 = pnand %p2047_p3, %p2041_p1 }
  0xbf   : > { %2051 = shalt.err (!%p2048_p11)
}
  0xc0   : > { %1778 = dma.hbm_to_vmem [thread:$0]  (!%p2419_p7), %s2462_s20, 384, %s2464_s0, %s2468_s4, %s2714_s25, %s2714_s25, %s2156_s29  }
  0xc1   : > { %p2716_p12 = scmp.ne.s32.totalorder %s2704_s19, 0 }
  0xc2   : > { %s2500_s5 = sand.u32 (!%p2716_p12), 1, %s2134_s10   ;;  %p2717_p6 = scmp.ne.s32.totalorder (!%p2716_p12), %s2701_s17, 0 }
  0xc3   : > { %396 = sbr.rel (%p2716_p12) target bundleno = 1517 (0x5ed), region = 56  ;;  %s1450_s28 = sshll.u32 (!%p2716_p12), %s2500_s5, 4 }
  0xc4   : > { %s399_s16 = scalar_lea.sflag (!%p2716_p12), [#allocation3], %s2500_s5  ;;  %s2506_s8 = scalar_lea.vmem (!%p2716_p12), [#allocation2], %s1450_s28 }
  0xca   : > { %2105 = dma.done.wait (%p2717_p6), %s399_s16, 256  }
  0xcb   : > { %2107 = vsyncadd (%p2717_p6), %s399_s16, 4294967040  ;;  %s407_s0 = sand.u32 1, %s2249_s15   ;;  %s1736_s4 = smul.u32 24, %s2500_s5 }
  0xcc   : > { %s408_s19 = scalar_lea.sflag [#allocation6], %s407_s0 }
  0xcd   : > { %s2514_s29 = scalar_lea.vmem [#allocation5], %s1736_s4 }
  0xce   : > { %2109 = dma.done.wait (%p2717_p6), %s408_s19, 384  }
  0xcf   : > { %2111 = vsyncadd (%p2717_p6), %s408_s19, 4294966912  ;;  %p2718_p7 = scmp.eq.s32.totalorder %s2249_s15, 0 }
  0xd1   : > { %2113 = dma.done.wait (%p2718_p7), [#allocation6], 1024   ;;  %p2719_p9 = pmov %p2718_p7 }
  0xd2   : > { %p2720_p0 = pmov %p2718_p7 }
  0xd3   : > { %2115 = vsyncadd (%p2719_p9), [#allocation6], 4294966272 }
  0xd4   : > { %2117 = dma.done.wait (%p2720_p0), [#allocation9], 1536   ;;  %p2721_p2 = pmov %p2720_p0 }
  0xd5   : > { %p2722_p13 = pmov %p2720_p0 }
  0xd6   : > { %2119 = vsyncadd (%p2721_p2), [#allocation9], 4294965760 }
  0xd7   : > { %2121 = dma.done.wait (%p2722_p13), [#allocation12], 1024   ;;  %p2723_p4 = pmov %p2720_p0 }
  0xd8   : > { %v2160_v0 = vmov 0.0|0.0   ;;  %vm2161_vm0 = vmmov 0   ;;  %v2162_v1 = vmov 0.0   ;;  %v571_v2 = vld [vmem:[#allocation8] sm:$0xff]  ;;  %v572_v3 = vld [vmem:[#allocation8 + $0x8] sm:$0xff]  ;;  %v573_v4 = vld [vmem:[#allocation8 + $0x10] sm:$0xff] }
  0xd9   : > { %2123 = vsyncadd (%p2723_p4), [#allocation12], 4294966272  ;;  %1680 = vmatprep.subr.bf16.mxu1 %v2160_v0  ;;  %1579 = vmatprep.mubr.msk.f32.mxu1 %vm2161_vm0, %v2162_v1  ;;  %v1681_v5 = vpack.c.bf16 %v572_v3, %v571_v2  ;;  %v574_v6 = vld [vmem:[#allocation8 + $0x18] sm:$0xff]  ;;  %v474_v7 = vld [vmem:[#allocation7] sm:$0xff]  ;;  %vm489_vm1 = vcmask 523264   ;;  %vm577_vm2 = vcmask 392192  }
  0xda   : > { %v475_v8 = vld [vmem:[#allocation7 + $0x8] sm:$0xff]  ;;  %v1684_v10 = vpack.c.bf16 %v574_v6, %v573_v4  ;;  %v575_v11 = vld [vmem:[#allocation8 + $0x20] sm:$0xff]  ;;  %v476_v12 = vld [vmem:[#allocation7 + $0x10] sm:$0xff]  ;;  %vm760_vm3 = vcmask 261120   ;;  %s2163_s25 = smov 96   ;;  %vm851_vm5 = vcmask 195584  }
  0xdb   : > { %v1664_v9 = vpack.c.bf16 %v475_v8, %v474_v7  ;;  %1682 = vmatpush3.bf16.msra.mxu1 %v1681_v5  ;;  %v477_v13 = vld [vmem:[#allocation7 + $0x18] sm:$0xff]  ;;  %v576_v14 = vld [vmem:[#allocation8 + $0x28] sm:$0xff]  ;;  %v478_v16 = vld [vmem:[#allocation7 + $0x20] sm:$0xff]  ;;  %s2164_s24 = smov 32   ;;  %s2726_s12 = sld [smem:[#allocation21_spill]] }
  0xdc   : > { %1683 = vmatprep.subr.bf16.mxu1 %v2160_v0  ;;  %v1668_v15 = vpack.c.bf16 %v477_v13, %v476_v12  ;;  %v479_v17 = vld [vmem:[#allocation7 + $0x28] sm:$0xff]  ;;  %v469_v18 = vld [vmem:[%s2506_s8] sm:$0xff]  ;;  %v1687_v20 = vpack.c.bf16 %v576_v14, %v575_v11  ;;  %v481_v22 = vld [vmem:[#allocation7 + $0x38] sm:$0xff]  ;;  %s466_s26 = scalar_lea.vmem [#allocation13], %s1450_s28  ;;  %s2727_s30 = sld [smem:[#allocation27_spill]] }
  0xdd   : > { %1665 = vmatprep.subr.bf16.mxu0 %v1664_v9  ;;  %v1672_v19 = vpack.c.bf16 %v479_v17, %v478_v16  ;;  %1564 = vmatprep.mubr.msk.f32.mxu0 %vm489_vm1, %v469_v18  ;;  %v480_v21 = vld [vmem:[#allocation7 + $0x30] sm:$0xff]  ;;  %v470_v26 = vld [vmem:[%s2506_s8 + $0x8] sm:$0xff]  ;;  %v473_v27 = vld [vmem:[%s2514_s29 + $0x10] sm:$0xff]  ;;  %s1289_s2 = sshll.u32 %s466_s26, 4  ;;  %s2728_s4 = sld [smem:[#allocation28_spill]]  ;;  %s2619_s2 = int_to_ptr.vmem [resolvable:$true] %s1289_s2 }
  0xde   : > { %1667 = vmatpush3.bf16.msra.mxu0 %v1664_v9  ;;  %v1676_v23 = vpack.c.bf16 %v481_v22, %v480_v21  ;;  %v471_v24 = vld [vmem:[%s2514_s29] sm:$0xff]  ;;  %v472_v25 = vld [vmem:[%s2514_s29 + $0x8] sm:$0xff]  ;;  %v669_v30 = vld [vmem:[#allocation10 + $0x10] sm:$0xff]  ;;  %s1274_s28 = scalar_lea.sflag [#allocation4], %s2500_s5  ;;  %s2052_s29 = scalar_lea.vmem %s2619_s2, 256 }
  0xdf   : > { %1669 = vmatprep.subr.bf16.mxu0 %v1668_v15  ;;  %1685 = vmatpush3.bf16.msra.mxu1 %v1684_v10  ;;  %v667_v28 = vld [vmem:[#allocation10] sm:$0xff]  ;;  %v668_v29 = vld [vmem:[#allocation10 + $0x8] sm:$0xff]  ;;  %v670_v32 = vld [vmem:[#allocation10 + $0x18] sm:$0xff]  ;;  %p2053_p1 = scmp.ne.s32.totalorder %s2619_s2, %s2052_s29  ;;  %s2165_s15 = smov [#allocation13]  }
  0xe0   : > { %1686 = vmatprep.subr.bf16.mxu1 %v2160_v0  ;;  %v1690_v31 = vpack.c.bf16 %v668_v29, %v667_v28  ;;  %v1693_v33 = vpack.c.bf16 %v670_v32, %v669_v30  ;;  %v671_v34 = vld [vmem:[#allocation10 + $0x20] sm:$0xff]  ;;  %v672_v35 = vld [vmem:[#allocation10 + $0x28] sm:$0xff]  ;;  %vm2565_vm4 = vmpackc.low %vm760_vm3, %vm760_vm3  ;;  %s2056_s17 = sshll.u32 %s2165_s15, 4  ;;  %s2057_s17 = int_to_ptr.vmem [resolvable:$false] %s2056_s17 }
  0xe1   : > { %v1696_v36 = vpack.c.bf16 %v672_v35, %v671_v34  ;;  %v1456_v44 = vld [vmem:[%s2678_s3] ss:$0 sm:$0xff]  ;;  %v1176_v40 = vld [vmem:[#allocation11 + $0x8] sm:$0xff]  ;;  %s1489_s16 = sshll.u32 %s2726_s12, 8  ;;  %p2054_p8 = pnand %p2053_p1, %p2398_p5 }
  0xe2   : > { %1671 = vmatpush3.bf16.msra.mxu0 %v1668_v15  ;;  %v1462_v51 = vld [vmem:[%s2681_s6] ss:$0 sm:$0xff]  ;;  %p2059_p3 = scmp.lt.s32.totalorder %s2619_s2, %s2057_s17 }
  0xe3   : > { %1673 = vmatprep.subr.bf16.mxu0 %v1672_v19  ;;  %1688 = vmatpush3.bf16.msra.mxu1 %v1687_v20  ;;  %s2624_s19 = scalar_lea.hbm %s2728_s4, %s1489_s16  ;;  %p2055_p10 = pneg %p2054_p8 }
  0xe4   : > { %1689 = vmatprep.subr.bf16.mxu1 %v2160_v0 }
  0xe6   : > { %1675 = vmatpush3.bf16.msra.mxu0 %v1672_v19  ;;  %1580 = vmatmul.mubr.msk.f32.vlgmr.msra.gmra.mrb[0].mxu1 %vm577_vm2, %v471_v24 }
  0xe7   : > { %1677 = vmatprep.subr.bf16.mxu0 %v1676_v23  ;;  %1582 = vmatprep.mubr.msk.f32.mxu1 %vm2161_vm0, %v2162_v1 }
  0xe8   : > { %1691 = vmatpush3.bf16.msra.mxu1 %v1690_v31 }
  0xe9   : > { %1692 = vmatprep.subr.bf16.mxu1 %v2160_v0 }
  0xea   : > { %1679 = vmatpush3.bf16.msra.mxu0 %v1676_v23  ;;  %1583 = vmatmul.mubr.msk.f32.gmra.mrb[2].mxu1 %vm577_vm2, %v472_v25 }
  0xeb   : > { %1585 = vmatprep.mubr.msk.f32.mxu1 %vm2161_vm0, %v2162_v1 }
  0xec   : > { %1694 = vmatpush3.bf16.msra.mxu1 %v1693_v33 }
  0xed   : > { %1565 = vmatmul.mubr.msk.f32.vlgmr.msra.gmra.mrb[0].mxu0 %vm489_vm1, %v470_v26  ;;  %1695 = vmatprep.subr.bf16.mxu1 %v2160_v0 }
  0xee   : > { %1586 = vmatmul.mubr.msk.f32.gmra.mrb[4].mxu1 %vm577_vm2, %v473_v27 }
  0xef   : > { %1600 = vmatprep.mubr.msk.f32.mxu1 %vm2161_vm0, %v2162_v1 }
  0xf0   : > { %1697 = vmatpush3.bf16.msra.mxu1 %v1696_v36 }
  0xf3   : > { %1601 = vmatmul.mubr.msk.f32.vlgmr.msra.gmra.mrb[6].mxu1 %vm577_vm2, %v471_v24 }
  0xf4   : > { %1603 = vmatprep.mubr.msk.f32.mxu1 %vm2161_vm0, %v2162_v1 }
  0xf7   : > { %1604 = vmatmul.mubr.msk.f32.gmra.mrb[8].mxu1 %vm577_vm2, %v472_v25 }
  0xf8   : > { %1606 = vmatprep.mubr.msk.f32.mxu1 %vm2161_vm0, %v2162_v1 }
  0xfb   : > { %1607 = vmatmul.mubr.msk.f32.gmra.mrb[10].mxu1 %vm577_vm2, %v473_v27 }
 0x1b9   : > { %v653_v37 = vpop.f32.mrb[0].mxu1 }
 0x1ba   : > { %v1581_v38 = vpop.f32.mrb[1].mxu1 }
 0x1bd   : > { %v658_v39 = vpop.f32.mrb[2].mxu1 }
 0x1be   : > { %v1698_v41 = vpack.c.bf16 %v658_v39, %v653_v37  ;;  %v1584_v42 = vpop.f32.mrb[3].mxu1  ;;  %v1854_v43 = vpack.i.bf16 %v658_v39, %v653_v37  ;;  %v1175_v39 = vld [vmem:[#allocation11] sm:$0xff] }
 0x1c0   : > { %v1566_v45 = vpop.f32.mrb[0].mxu0  ;;  %1855 = vrot.lane.b32.xlu0 %v1854_v43, %s2163_s25  ;;  %1700 = vmatprep.subr.msk.bf16.mxu0 %vm2565_vm4, %v1698_v41  ;;  %v1718_v43 = vpack.c.bf16 %v1176_v40, %v1175_v39 }
 0x1c1   : > { %v562_v46 = vpop.f32.mrb[1].mxu0  ;;  %1703 = vmatpush3.bf16.xpose.msk.msra.mxu0 %vm2565_vm4, %v1698_v41  ;;  %v663_v48 = vpop.f32.mrb[4].mxu1  ;;  %v568_v50 = vadd.f32 %v1566_v45, %v1456_v44  ;;  %v1177_v41 = vld [vmem:[#allocation11 + $0x10] sm:$0xff] }
 0x1c2   : > { %v563_v47 = vadd.f32 %v1456_v44, %v562_v46  ;;  %1613 = vmatprep.subr.msk.mxu0 %vm760_vm3, %v663_v48  ;;  %v1587_v49 = vpop.f32.mrb[5].mxu1  ;;  %v1178_v44 = vld [vmem:[#allocation11 + $0x18] sm:$0xff] }
 0x1c3   : > { %v1722_v46 = vpack.c.bf16 %v1178_v44, %v1177_v41 }
 0x1c4   : > { %955 = vrot.lane.b32.xlu1 %v563_v47, %s2163_s25  ;;  %1615 = vmatprep.mubr.msk.f32.mxu0 %vm760_vm3, %v563_v47  ;;  %v1179_v47 = vld [vmem:[#allocation11 + $0x20] sm:$0xff] }
 0x1c5   : > { %963 = vrot.lane.b32.xlu0 %v663_v48, %s2163_s25 }
 0x1c6   : > { %v746_v52 = vpop.f32.mrb[6].mxu1 }
 0x1c7   : > { %v1602_v53 = vpop.f32.mrb[7].mxu1  ;;  %v747_v54 = vadd.f32 %v1462_v51, %v746_v52 }
 0x1c8   : > { %957 = vrot.lane.b32.xlu1 %v568_v50, %s2163_s25 }
 0x1c9   : > { %1614 = vmatpush3.xpose.msk.msra.mxu0 %vm760_vm3, %v663_v48  ;;  %v1180_v48 = vld [vmem:[#allocation11 + $0x28] sm:$0xff] }
 0x1ca   : > { %v751_v55 = vpop.f32.mrb[8].mxu1  ;;  %v1726_v49 = vpack.c.bf16 %v1180_v48, %v1179_v47 }
 0x1cb   : > { %v752_v57 = vadd.f32 %v1462_v51, %v751_v55  ;;  %v1605_v58 = vpop.f32.mrb[9].mxu1 }
 0x1cc   : > { %1616 = vmatmul.mubr.msk.f32.vlgmr.msra.gmra.mrb[2].mxu0 %vm760_vm3, %v568_v50  ;;  %v1181_v50 = vld [vmem:[#allocation11 + $0x30] sm:$0xff] }
 0x1cd   : > { %v1859_v61 = vpack.i.bf16 %v752_v57, %v747_v54  ;;  %v1704_v62 = vpack.c.bf16 %v752_v57, %v747_v54 }
 0x1ce   : > { %v756_v1 = vpop.f32.mrb[10].mxu1 }
 0x1cf   : > { %1705 = vmatprep.subr.bf16.mxu0 %v1704_v62  ;;  %v757_v3 = vadd.f32 %v1462_v51, %v756_v1  ;;  %v1608_v4 = vpop.f32.mrb[11].mxu1  ;;  %v1182_v51 = vld [vmem:[#allocation11 + $0x38] sm:$0xff] }
 0x1d0   : > { %1707 = vmatpush3.bf16.msra.mxu0 %v1704_v62  ;;  %v1730_v52 = vpack.c.bf16 %v1182_v51, %v1181_v50 }
 0x1d1   : > { %1622 = vmatprep.subr.mxu0 %v757_v3 }
 0x1d4   : > { %1623 = vmatpush3.msra.mxu0 %v757_v3 }
 0x232   : > { %v1856_v56 = vpop.permute.xlu0 %1855 }
 0x233   : > { %v1858_v59 = vunpack.i.h.bf16 %v1856_v56  ;;  %v1857_v60 = vunpack.i.l.bf16 %v1856_v56 }
 0x235   : > { %v1708_v63 = vpack.c.bf16 %v1858_v59, %v1857_v60 }
 0x236   : > { %v956_v0 = vpop.permute.xlu1 %955 }
 0x237   : > { %v964_v2 = vpop.permute.xlu0 %963  ;;  %1633 = vmatprep.mubr.msk.f32.mxu1 %vm760_vm3, %v956_v0  ;;  %1710 = vmatprep.subr.msk.bf16.mxu1 %vm2565_vm4, %v1708_v63 }
 0x238   : > { %1713 = vmatpush3.bf16.xpose.msk.msra.mxu1 %vm2565_vm4, %v1708_v63 }
 0x239   : > { %1631 = vmatprep.subr.msk.mxu1 %vm760_vm3, %v964_v2 }
 0x23a   : > { %v958_v5 = vpop.permute.xlu1 %957 }
 0x240   : > { %1632 = vmatpush3.xpose.msk.msra.mxu1 %vm760_vm3, %v964_v2 }
 0x241   : > { %1719 = vmatprep.subr.bf16.mxu1 %v1718_v43 }
 0x243   : > { %1634 = vmatmul.mubr.msk.f32.vlgmr.msra.gmra.mrb[12].mxu1 %vm760_vm3, %v958_v5 }
 0x244   : > { %1721 = vmatpush3.bf16.msra.mxu1 %v1718_v43 }
 0x245   : > { %1723 = vmatprep.subr.bf16.mxu1 %v1722_v46 }
 0x248   : > { %1725 = vmatpush3.bf16.msra.mxu1 %v1722_v46 }
 0x249   : > { %1727 = vmatprep.subr.bf16.mxu1 %v1726_v49 }
 0x24c   : > { %1729 = vmatpush3.bf16.msra.mxu1 %v1726_v49 }
 0x24d   : > { %1731 = vmatprep.subr.bf16.mxu1 %v1730_v52 }
 0x250   : > { %1733 = vmatpush3.bf16.msra.mxu1 %v1730_v52 }
 0x29f   : > { %v1617_v6 = vpop.f32.mrb[2].mxu0 }
 0x2a0   : > { %v842_v7 = vpop.f32.mrb[3].mxu0  ;;  %v855_v8 = vsel %vm851_vm5, %v1617_v6, -inf }
 0x2a1   : > { %856 = vmax.xlane.f32.xlu1 %v855_v8  ;;  %v852_v9 = vsel %vm851_vm5, %v842_v7, -inf }
 0x2a2   : > { %853 = vmax.xlane.f32.xlu0 %v852_v9 }
 0x2b2   : > { %1860 = vrot.lane.b32.xlu1 %v1859_v61, %s2163_s25 }
 0x316   : > { %v1635_v10 = vpop.f32.mrb[12].mxu1 }
 0x317   : > { %v1041_v11 = vpop.f32.mrb[13].mxu1  ;;  %v1053_v12 = vsel %vm851_vm5, %v1635_v10, -inf }
 0x318   : > { %1054 = vmax.xlane.f32.xlu0 %v1053_v12  ;;  %v1050_v13 = vsel %vm851_vm5, %v1041_v11, -inf }
 0x31c   : > { %1051 = vmax.xlane.f32.xlu0 %v1050_v13 }
 0x32e   : > { %v857_v14 = vpop.xlane.xlu1 %856 }
 0x32f   : > { %v859_v15 = vsub.f32 %v1617_v6, %v857_v14  ;;  %v854_v16 = vpop.xlane.xlu0 %853 }
 0x330   : > { %v858_v17 = vsub.f32 %v842_v7, %v854_v16  ;;  %v1480_v7 = vld [vmem:[%s2727_s30] ss:$0 sm:$0xff] }
 0x331   : > { %v862_v18 = vmul.f32 1.442695, %v859_v15 }
 0x332   : > { %v860_v19 = vmul.f32 1.442695, %v858_v17  ;;  %1075 = vrot.lane.b32.xlu0 %v757_v3, %s2163_s25  ;;  %v1861_v20 = vpop.permute.xlu1 %1860  ;;  %s2058_s25 = scalar_lea.vmem %s2057_s17, 512 }
 0x333   : > { %v1863_v21 = vunpack.i.h.bf16 %v1861_v20  ;;  %v1862_v22 = vunpack.i.l.bf16 %v1861_v20  ;;  %p2060_p11 = scmp.lt.s32.totalorder %s2058_s25, %s2052_s29 }
 0x334   : > { %1864 = vpow2.f32 %v860_v19 }
 0x335   : > { %1866 = vpow2.f32 %v862_v18  ;;  %v1714_v23 = vpack.c.bf16 %v1863_v21, %v1862_v22  ;;  %p2061_p12 = por %p2060_p11, %p2059_p3 }
 0x337   : > { %1715 = vmatprep.subr.bf16.mxu0 %v1714_v23  ;;  %p2062_p6 = pnand %p2061_p12, %p2055_p10 }
 0x33e   : > { %v1865_v24 = vpop.eup %1864 }
 0x33f   : > { %v1867_v25 = vpop.eup %1866  ;;  %1624 = vmatprep.mubr.msk.f32.mxu0 %vm851_vm5, %v1865_v24  ;;  %v864_v38 = vsel %vm851_vm5, %v1865_v24, 0.0 }
 0x340   : > { %1625 = vmatmul.mubr.msk.f32.vlgmr.msra.gmra.mrb[4].mxu0 %vm851_vm5, %v1867_v25  ;;  %v867_v36 = vsel %vm851_vm5, %v1867_v25, 0.0 }
 0x341   : > { %1717 = vmatpush3.bf16.msra.mxu0 %v1714_v23 }
 0x3a5   : > { %v1055_v26 = vpop.xlane.xlu0 %1054 }
 0x3a6   : > { %v1057_v27 = vsub.f32 %v1635_v10, %v1055_v26 }
 0x3a8   : > { %v1060_v28 = vmul.f32 1.442695, %v1057_v27 }
 0x3a9   : > { %v1052_v29 = vpop.xlane.xlu0 %1051 }
 0x3aa   : > { %1868 = vpow2.f32 %v1060_v28  ;;  %v1056_v30 = vsub.f32 %v1041_v11, %v1052_v29 }
 0x3ac   : > { %v1058_v31 = vmul.f32 1.442695, %v1056_v30 }
 0x3ad   : > { %v1076_v32 = vpop.permute.xlu0 %1075 }
 0x3ae   : > { %1870 = vpow2.f32 %v1058_v31  ;;  %1640 = vmatprep.subr.mxu0 %v1076_v32 }
 0x3af   : > { %1641 = vmatpush3.msra.mxu0 %v1076_v32 }
 0x3b4   : > { %v1869_v33 = vpop.eup %1868 }
 0x3b5   : > { %v1065_v34 = vsel %vm851_vm5, %v1869_v33, 0.0 }
 0x3b6   : > { %1066 = vadd.xlane.f32.xlu0 %v1065_v34 }
 0x3b8   : > { %v1871_v35 = vpop.eup %1870 }
 0x3b9   : > { %1642 = vmatprep.mubr.msk.f32.mxu0 %vm851_vm5, %v1871_v35  ;;  %v1062_v37 = vsel %vm851_vm5, %v1871_v35, 0.0 }
 0x3ba   : > { %868 = vadd.xlane.f32.xlu0 %v867_v36  ;;  %1063 = vadd.xlane.f32.xlu1 %v1062_v37 }
 0x3bb   : > { %1643 = vmatmul.mubr.msk.f32.vlgmr.msra.gmra.mrb[6].mxu0 %vm851_vm5, %v1869_v33 }
 0x3be   : > { %865 = vadd.xlane.f32.xlu1 %v864_v38 }
 0x413   : > { %v1626_v42 = vpop.f32.mrb[4].mxu0 }
 0x414   : > { %v942_v45 = vpop.f32.mrb[5].mxu0 }
 0x443   : > { %v1067_v53 = vpop.xlane.xlu0 %1066 }
 0x444   : > { %1872 = vrcp.f32 %v1067_v53 }
 0x447   : > { %v1064_v54 = vpop.xlane.xlu1 %1063  ;;  %v869_v62 = vpop.xlane.xlu0 %868 }
 0x448   : > { %1874 = vrcp.f32 %v1064_v54 }
 0x44b   : > { %v866_v61 = vpop.xlane.xlu1 %865 }
 0x44c   : > { %1876 = vrcp.f32 %v866_v61 }
 0x44d   : > { %1878 = vrcp.f32 %v869_v62 }
 0x44e   : > { %v1873_v55 = vpop.eup %1872 }
 0x452   : > { %v1875_v57 = vpop.eup %1874 }
 0x456   : > { %v1877_v63 = vpop.eup %1876 }
 0x457   : > { %v1879_v0 = vpop.eup %1878  ;;  %v953_v2 = vmul.f32 %v1877_v63, %v942_v45 }
 0x458   : > { %v954_v3 = vmul.f32 %v1879_v0, %v1626_v42 }
 0x48e   : > { %v1644_v56 = vpop.f32.mrb[6].mxu0 }
 0x48f   : > { %v1164_v58 = vmul.f32 %v1873_v55, %v1644_v56  ;;  %v1152_v59 = vpop.f32.mrb[7].mxu0 }
 0x490   : > { %v1163_v60 = vmul.f32 %v1875_v57, %v1152_v59 }
 0x491   : > { %1169 = vrot.lane.b32.xlu0 %v1164_v58, %s2164_s24 }
 0x492   : > { %1167 = vrot.lane.b32.xlu1 %v1163_v60, %s2164_s24 }
 0x503   : > { %v1170_v1 = vpop.permute.xlu0 %1169 }
 0x504   : > { %v1168_v4 = vpop.permute.xlu1 %1167  ;;  %v1174_v6 = vsel %vm760_vm3, %v954_v3, %v1170_v1 }
 0x505   : > { %v1173_v5 = vsel %vm760_vm3, %v953_v2, %v1168_v4 }
 0x506   : > { %1661 = vmatprep.mubr.msk.f32.mxu1 %vm489_vm1, %v1173_v5 }
 0x507   : > { %1662 = vmatmul.mubr.msk.f32.vlgmr.msra.gmra.mrb[14].mxu1 %vm489_vm1, %v1174_v6 }
 0x5da   : > { %v1663_v8 = vpop.f32.mrb[14].mxu1 }
 0x5db   : > { %v1268_v9 = vadd.f32 %v1663_v8, %v1480_v7  ;;  %v1262_v10 = vpop.f32.mrb[15].mxu1 }
 0x5dc   : > { %v1263_v11 = vadd.f32 %v1480_v7, %v1262_v10 }
 0x5dd   : > { %1272 = vst.msk [vmem:[%s466_s26 + $0x8] sm:$0xff] %vm489_vm1, %v1268_v9 }
 0x5de   : > { %1271 = vst.msk [vmem:[%s466_s26] sm:$0xff] %vm489_vm1, %v1263_v11 }
 0x5df   : > { %2065 = shalt.err (!%p2062_p6)
}
 0x5e0   : > { %s2066_s20 = scalar_lea.hbm %s2624_s19, 256  ;;  %s2070_s12 = scalar_lea.hbm %s2728_s4, 512 }
 0x5e1   : > { %p2067_p7 = scmp.ne.s32.totalorder %s2624_s19, %s2066_s20  ;;  %p2071_p2 = scmp.lt.u32.totalorder %s2624_s19, %s2728_s4 }
 0x5e2   : > { %p2072_p13 = scmp.lt.u32.totalorder %s2070_s12, %s2066_s20  ;;  %p2074_p1 = scmp.lt.u32.totalorder %s2066_s20, %s2624_s19 }
 0x5e3   : > { %p2068_p9 = pnand %p2067_p7, %p2398_p5 }
 0x5e4   : > { %p2073_p4 = por %p2072_p13, %p2071_p2 }
 0x5e5   : > { %p2069_p0 = pneg %p2068_p9 }
 0x5e6   : > { %p2075_p8 = por %p2074_p1, %p2073_p4 }
 0x5e8   : > { %p2076_p10 = pnand %p2075_p8, %p2069_p0 }
 0x5ea   : > { %2079 = shalt.err (!%p2076_p10)
}
 0x5eb   : > { %s2166_s22 = smov 128   ;;  %s2167_s30 = smov 8  }
 0x5ec   : > { %1757 = dma.vmem_to_hbm [thread:$0]  (%p2398_p5), %s2619_s2, 256, %s2624_s19, %s1274_s28, %s2166_s22, %s2166_s22, %s2167_s30  }
 0x5ed PF: > { %s2729_s16 = sld [smem:[#allocation20_spill]]  ;;  %s2730_s8 = sld [smem:[#allocation22_spill]] }
 0x5ee   : > { %p2732_p11 = scmp.ge.s32.totalorder %s2150_s14, 2 }
 0x5f3   : > { %s1304_s0 = sand.u32 1, %s2729_s16   ;;  %p2731_p3 = scmp.ne.s32.totalorder %s2730_s8, 0 }
 0x5f4   : > { %s1305_s29 = scalar_lea.sflag [#allocation4], %s1304_s0 }
 0x5f5   : > { %p1780_p12 = pnand %p2732_p11, %p2731_p3 }
 0x5f7   : > { %2125 = dma.done.wait (!%p1780_p12), %s1305_s29, 256  }
 0x5f8   : > { %2127 = vsyncadd (!%p1780_p12), %s1305_s29, 4294967040  ;;  %s30_s14 = sadd.s32 1, %s2150_s14   ;;  %s2733_s30 = smov %s2134_s10 }
 0x5f9   : > { %p27_p6 = scmp.ge.s32.totalorder %s30_s14, 4   ;;  %s2734_s10 = smov %s2138_s11 }
 0x5fa   : > { %s2735_s11 = smov %s2410_s23  ;;  %s2736_s12 = smov %s2146_s13 }
 0x5fb   : > { %s2737_s13 = smov %s2739_s18  ;;  %29 = sbr.rel (!%p27_p6) target bundleno = 17 (0x11), region = 130 }
 0x602   :  { %1310 = vsyncpa [#allocation3], 1 }
 0x603   :  { %1312 = vsyncpa [#allocation3 + $0x1], 1 }
 0x604   :  { %1313 = vsyncpa [#allocation6], 1 }
 0x605   :  { %1315 = vsyncpa [#allocation6 + $0x1], 1 }
 0x606   :  { %1316 = vsyncpa [#allocation9], 1 }
 0x607   :  { %1317 = vsyncpa [#allocation12], 1 }
 0x608   :  { %1318 = vsyncpa [#allocation4], 1 }
 0x609   :  { %1320 = vsyncpa [#allocation4 + $0x1], 1 }

</bundles_post_ra>
